<compile_context>
chip_gen: v7x
topology: tpu7x:2x2x1
jax: 0.10.0
libtpu: 0.0.40
codegen_flags: <defaults>
</compile_context>

<pallas_src>
import functools

import jax
import jax.numpy as jnp
from jax.experimental import pallas as pl
from jax.experimental.pallas import tpu as pltpu

LANE = 128
SUBLANE = 8
SMOOTH = 1e-10


def _bce_sum_kernel(p_ref, t_ref, out_ref, acc_ref, *, n_elems, tm):
    p_idx = pl.program_id(0)          # parallel (row-chunk) axis
    t_idx = pl.program_id(1)          # reduction axis
    n_inner = pl.num_programs(1)

    @pl.when(t_idx == 0)
    def _():
        acc_ref[...] = jnp.zeros_like(acc_ref)

    # Global element offset of this (tm, 128) tile.
    tile = p_idx * n_inner + t_idx
    base = tile * (tm * LANE)

    # Stream original dtype from HBM; cast to f32 in-kernel (free under mem bound).
    p = p_ref[...].astype(jnp.float32)
    t = t_ref[...].astype(jnp.float32)

    # In-kernel validity mask (replaces the old 3rd HBM stream).
    row_ids = jax.lax.broadcasted_iota(jnp.int32, (tm, LANE), 0)
    col_ids = jax.lax.broadcasted_iota(jnp.int32, (tm, LANE), 1)
    gidx = base + row_ids * LANE + col_ids
    mask = gidx < n_elems

    ce = -(t * jnp.log(p + SMOOTH) + (1.0 - t) * jnp.log(1.0 - p + SMOOTH))
    ce = jnp.where(mask, ce, 0.0)     # where-select: garbage/NaN tail cannot leak

    # Fold (tm, 128) into the (8, 128) accumulator with plain VPU adds; the
    # reshape is layout-preserving (minor dims already (8, 128) tiled).
    acc_ref[...] += ce.reshape(tm // SUBLANE, SUBLANE, LANE).sum(axis=0)

    @pl.when(t_idx == n_inner - 1)
    def _():
        out_ref[0] = acc_ref[...]


def boundary_loss(preds, targets, *, max_rows_per_tile=2048):
    """Equivalent of boundaryLoss.forward: scalar float32 mean BCE."""
    n = preds.size
    p_flat = preds.reshape(-1)
    t_flat = targets.reshape(-1)

    # Pad the ragged tail (only if needed) so rows is a multiple of 8 and the
    # flat length is a multiple of 128.  At most 1023 extra elements.
    chunk = SUBLANE * LANE
    padded = pl.cdiv(n, chunk) * chunk
    pad = padded - n
    if pad:
        p_flat = jnp.pad(p_flat, (0, pad))
        t_flat = jnp.pad(t_flat, (0, pad))

    rows = padded // LANE
    p2 = p_flat.reshape(rows, LANE)
    t2 = t_flat.reshape(rows, LANE)

    # Row tile: large (better HBM roofline), multiple of 8, capped by rows.
    tm = min(max_rows_per_tile, rows)
    num_tiles = pl.cdiv(rows, tm)          # last tile may extend OOB -> masked
    P = 2 if num_tiles >= 2 else 1         # megacore split on v7x
    T = pl.cdiv(num_tiles, P)

    def in_map(p, t):
        # Clamp so out-of-range programs re-read a valid block; their mask is
        # all-false so they contribute exactly 0 (no double counting).
        return (jnp.minimum(p * T + t, num_tiles - 1), 0)

    kernel = functools.partial(_bce_sum_kernel, n_elems=n, tm=tm)
    itemsize = jnp.dtype(p2.dtype).itemsize + jnp.dtype(t2.dtype).itemsize

    partials = pl.pallas_call(
        kernel,
        out_shape=jax.ShapeDtypeStruct((P, SUBLANE, LANE), jnp.float32),
        grid_spec=pltpu.PrefetchScalarGridSpec(
            num_scalar_prefetch=0,
            grid=(P, T),
            in_specs=[
                pl.BlockSpec((tm, LANE), in_map),
                pl.BlockSpec((tm, LANE), in_map),
            ],
            out_specs=pl.BlockSpec((1, SUBLANE, LANE), lambda p, t: (p, 0, 0)),
            scratch_shapes=[pltpu.VMEM((SUBLANE, LANE), jnp.float32)],
        ),
        compiler_params=pltpu.CompilerParams(
            dimension_semantics=("parallel", "arbitrary"),
        ),
        cost_estimate=pl.CostEstimate(
            flops=8 * n,
            transcendentals=2 * n,
            bytes_accessed=padded * itemsize + P * SUBLANE * LANE * 4,
        ),
    )(p2, t2)

    total = jnp.sum(partials, dtype=jnp.float32)
    return (total / jnp.float32(n)).astype(jnp.float32)


def _reference(preds, targets):
    p = preds.astype(jnp.float32)
    t = targets.astype(jnp.float32)
    return jnp.mean(
        -(t * jnp.log(p + SMOOTH) + (1.0 - t) * jnp.log(1.0 - p + SMOOTH))
    )


if __name__ == "__main__":
    key = jax.random.PRNGKey(0)
    k_p, k_t, k_p2, k_t2 = jax.random.split(key, 4)

    # Case 1: segmentation-style NCHW maps (exactly lane-aligned).
    shape = (2, 4, 16, 16)
    preds = jax.nn.sigmoid(jax.random.normal(k_p, shape, dtype=jnp.float32))
    targets = (jax.random.uniform(k_t, shape) > 0.5).astype(jnp.float32)

    loss = boundary_loss(preds, targets)
    jax.block_until_ready(loss)
    ref = _reference(preds, targets)
    assert jnp.allclose(loss, ref, rtol=1e-5, atol=1e-6), (loss, ref)

    # Case 2: same data, tiny tile -> exercises multi-tile 2-D grid
    # (parallel axis of 2) and the per-chunk accumulator reset/writeback.
    loss_mt = boundary_loss(preds, targets, max_rows_per_tile=8)
    jax.block_until_ready(loss_mt)
    assert jnp.allclose(loss_mt, ref, rtol=1e-5, atol=1e-6), (loss_mt, ref)

    # Case 3: ragged element count (not a multiple of 128) -> exercises the
    # tail pad + in-kernel iota mask.
    shape_r = (2, 3, 7, 11)
    preds_r = jax.nn.sigmoid(jax.random.normal(k_p2, shape_r, dtype=jnp.float32))
    targets_r = (jax.random.uniform(k_t2, shape_r) > 0.5).astype(jnp.float32)
    loss_r = boundary_loss(preds_r, targets_r)
    jax.block_until_ready(loss_r)
    ref_r = _reference(preds_r, targets_r)
    assert jnp.allclose(loss_r, ref_r, rtol=1e-5, atol=1e-6), (loss_r, ref_r)

    print("KERNEL_OK")
</pallas_src>

<mosaic_0001>
module attributes {stable_mosaic.version = 11 : i64} {
  func.func @_bce_sum_kernel(%arg0: i32, %arg1: i32, %arg2: memref<16x128xf32, #tpu.memory_space<vmem>>, %arg3: memref<16x128xf32, #tpu.memory_space<vmem>>, %arg4: memref<1x8x128xf32, #tpu.memory_space<vmem>>, %arg5: memref<8x128xf32, #tpu.memory_space<vmem>>) attributes {dimension_semantics = [#tpu.dimension_semantics<parallel>, #tpu.dimension_semantics<arbitrary>], iteration_bounds = array<i64: 1, 1>, scalar_prefetch = 0 : i64, scratch_operands = 1 : i64, tpu.core_type = #tpu.core_type<tc>, window_params = [{transform_indices = @transform_0, window_bounds = array<i64: 16, 128>}, {transform_indices = @transform_1, window_bounds = array<i64: 16, 128>}, {transform_indices = @transform_2, window_bounds = array<i64: 1, 8, 128>}]} {
    %c0_i32 = arith.constant 0 : i32
    %0 = arith.cmpi eq, %arg1, %c0_i32 : i32
    %1 = arith.extui %0 : i1 to i32
    %c0_i32_0 = arith.constant 0 : i32
    %2 = arith.cmpi ne, %1, %c0_i32_0 : i32
    scf.if %2 {
      %cst_17 = arith.constant 0.000000e+00 : f32
      %42 = vector.broadcast %cst_17 : f32 to vector<8x128xf32>
      %c0_18 = arith.constant 0 : index
      %c0_19 = arith.constant 0 : index
      %43 = vector.load %arg5[%c0_18, %c0_19] : memref<8x128xf32, #tpu.memory_space<vmem>>, vector<8x128xf32>
      tpu.vector_store %arg5[%c0_18, %c0_19], %42 {strides = array<i32>} : memref<8x128xf32, #tpu.memory_space<vmem>>, vector<8x128xf32>,
    } else {
    }
    %c1_i32 = arith.constant 1 : i32
    %3 = arith.muli %arg0, %c1_i32 : i32
    %4 = arith.addi %3, %arg1 : i32
    %c2048_i32 = arith.constant 2048 : i32
    %5 = arith.muli %4, %c2048_i32 : i32
    %c0 = arith.constant 0 : index
    %c0_1 = arith.constant 0 : index
    %6 = vector.load %arg2[%c0, %c0_1] : memref<16x128xf32, #tpu.memory_space<vmem>>, vector<16x128xf32>
    %c0_2 = arith.constant 0 : index
    %c0_3 = arith.constant 0 : index
    %7 = vector.load %arg3[%c0_2, %c0_3] : memref<16x128xf32, #tpu.memory_space<vmem>>, vector<16x128xf32>
    %8 = tpu.iota {dimensions = array<i32: 0>} : vector<16x128xi32>
    %9 = tpu.iota {dimensions = array<i32: 1>} : vector<16x128xi32>
    %c128_i32 = arith.constant 128 : i32
    %10 = vector.broadcast %c128_i32 : i32 to vector<16x128xi32>
    %11 = arith.muli %8, %10 : vector<16x128xi32>
    %12 = vector.broadcast %5 : i32 to vector<16x128xi32>
    %13 = arith.addi %12, %11 : vector<16x128xi32>
    %14 = arith.addi %13, %9 : vector<16x128xi32>
    %c2048_i32_4 = arith.constant 2048 : i32
    %15 = vector.broadcast %c2048_i32_4 : i32 to vector<16x128xi32>
    %16 = arith.cmpi slt, %14, %15 : vector<16x128xi32>
    %cst = arith.constant 1.000000e-10 : f32
    %17 = vector.broadcast %cst : f32 to vector<16x128xf32>
    %18 = arith.addf %6, %17 : vector<16x128xf32>
    %19 = math.log %18 : vector<16x128xf32>
    %20 = arith.mulf %7, %19 : vector<16x128xf32>
    %cst_5 = arith.constant 1.000000e+00 : f32
    %21 = vector.broadcast %cst_5 : f32 to vector<16x128xf32>
    %22 = arith.subf %21, %7 : vector<16x128xf32>
    %cst_6 = arith.constant 1.000000e+00 : f32
    %23 = vector.broadcast %cst_6 : f32 to vector<16x128xf32>
    %24 = arith.subf %23, %6 : vector<16x128xf32>
    %cst_7 = arith.constant 1.000000e-10 : f32
    %25 = vector.broadcast %cst_7 : f32 to vector<16x128xf32>
    %26 = arith.addf %24, %25 : vector<16x128xf32>
    %27 = math.log %26 : vector<16x128xf32>
    %28 = arith.mulf %22, %27 : vector<16x128xf32>
    %29 = arith.addf %20, %28 : vector<16x128xf32>
    %cst_8 = arith.constant 0.000000e+00 : f32
    %30 = vector.broadcast %cst_8 : f32 to vector<16x128xf32>
    %31 = arith.subf %30, %29 : vector<16x128xf32>
    %cst_9 = arith.constant 0.000000e+00 : f32
    %32 = vector.broadcast %cst_9 : f32 to vector<16x128xf32>
    %33 = arith.select %16, %31, %32 : vector<16x128xi1>, vector<16x128xf32>
    %c0_10 = arith.constant 0 : index
    %c0_11 = arith.constant 0 : index
    %34 = vector.load %arg5[%c0_10, %c0_11] : memref<8x128xf32, #tpu.memory_space<vmem>>, vector<8x128xf32>
    %35 = vector.shape_cast %33 : vector<16x128xf32> to vector<2x8x128xf32>
    %cst_12 = arith.constant dense<0.000000e+00> : vector<8x128xf32>
    %36 = vector.multi_reduction <add>, %35, %cst_12 [0] : vector<2x8x128xf32> to vector<8x128xf32>
    %37 = arith.addf %34, %36 : vector<8x128xf32>
    %c0_13 = arith.constant 0 : index
    %c0_14 = arith.constant 0 : index
    %38 = vector.load %arg5[%c0_13, %c0_14] : memref<8x128xf32, #tpu.memory_space<vmem>>, vector<8x128xf32>
    tpu.vector_store %arg5[%c0_13, %c0_14], %37 {strides = array<i32>} : memref<8x128xf32, #tpu.memory_space<vmem>>, vector<8x128xf32>,
    %c0_i32_15 = arith.constant 0 : i32
    %39 = arith.cmpi eq, %arg1, %c0_i32_15 : i32
    %40 = arith.extui %39 : i1 to i32
    %c0_i32_16 = arith.constant 0 : i32
    %41 = arith.cmpi ne, %40, %c0_i32_16 : i32
    scf.if %41 {
      %c0_17 = arith.constant 0 : index
      %c0_18 = arith.constant 0 : index
      %42 = vector.load %arg5[%c0_17, %c0_18] : memref<8x128xf32, #tpu.memory_space<vmem>>, vector<8x128xf32>
      %c0_19 = arith.constant 0 : index
      %c0_20 = arith.constant 0 : index
      %c0_21 = arith.constant 0 : index
      %43 = vector.load %arg4[%c0_19, %c0_20, %c0_21] : memref<1x8x128xf32, #tpu.memory_space<vmem>>, vector<1x8x128xf32>
      %44 = vector.shape_cast %43 : vector<1x8x128xf32> to vector<8x128xf32>
      %45 = vector.shape_cast %42 : vector<8x128xf32> to vector<1x8x128xf32>
      tpu.vector_store %arg4[%c0_19, %c0_20, %c0_21], %45 {strides = array<i32>} : memref<1x8x128xf32, #tpu.memory_space<vmem>>, vector<1x8x128xf32>,
    } else {
    }
    return
  }
  func.func @transform_0(%arg0: i32, %arg1: i32) -> (i32, i32) {
    %c1_i32 = arith.constant 1 : i32
    %0 = arith.muli %arg0, %c1_i32 : i32
    %1 = arith.addi %0, %arg1 : i32
    %c0_i32 = arith.constant 0 : i32
    %2 = arith.minsi %1, %c0_i32 : i32
    %c0_i32_0 = arith.constant 0 : i32
    %c0_i32_1 = arith.constant 0 : i32
    return %2, %c0_i32_0 : i32, i32
  }
  func.func @transform_1(%arg0: i32, %arg1: i32) -> (i32, i32) {
    %c1_i32 = arith.constant 1 : i32
    %0 = arith.muli %arg0, %c1_i32 : i32
    %1 = arith.addi %0, %arg1 : i32
    %c0_i32 = arith.constant 0 : i32
    %2 = arith.minsi %1, %c0_i32 : i32
    %c0_i32_0 = arith.constant 0 : i32
    %c0_i32_1 = arith.constant 0 : i32
    return %2, %c0_i32_0 : i32, i32
  }
  func.func @transform_2(%arg0: i32, %arg1: i32) -> (i32, i32, i32) {
    %c0_i32 = arith.constant 0 : i32
    %c0_i32_0 = arith.constant 0 : i32
    %c0_i32_1 = arith.constant 0 : i32
    return %arg0, %c0_i32, %c0_i32_0 : i32, i32, i32
  }
}

</mosaic_0001>

<bundles_post_ra>
// kernel: tpu_custom_call.1
= control target key start
LH: loop header
LB: loop body
LE: loop exit
PB: predicated region body
PF: predicated region fallthrough
CT: control target
= control target key end

     0   :  { %7 = vsyncpa [#allocation4], 0  ;;  %s281_s0 = inlined_call_operand.hbm [shape: f32[16,128], index: 0, kind: input, shape index: {}]   ;;  %s282_s1 = inlined_call_operand.hbm [shape: f32[16,128], index: 1, kind: input, shape index: {}]   ;;  %s283_s2 = inlined_call_operand.hbm [shape: f32[1,8,128], index: 2, kind: output, shape index: {}]  }
   0x1   :  { %8 = vsyncpa [#allocation7], 0 }
   0x2   :  { %9 = vsyncpa [#allocation5], 0  ;;  %s225_s9 = smov [#allocation3]   ;;  %s153_s13 = scalar_lea.hbm %s281_s0, 256 }
   0x3   :  { %s21_s10 = sshll.u32 %s225_s9, 4  ;;  %p154_p0 = scmp.ne.s32.totalorder %s281_s0, %s153_s13  ;;  %s22_s10 = int_to_ptr.vmem [resolvable:$true] %s21_s10 }
   0x4   :  { %p157_p1 = scmp.lt.u32.totalorder %s153_s13, %s281_s0 }
   0x6   :  { %p159_p2 = pnand %p157_p1, %p154_p0 }
   0x8   :  { %162 = shalt.err (!%p159_p2)
}
   0x9   :  { %s163_s18 = scalar_lea.vmem %s22_s10, 256  ;;  %p168_p4 = scmp.lt.s32.totalorder %s22_s10, %s22_s10 }
   0xa   :  { %p164_p3 = scmp.ne.s32.totalorder %s22_s10, %s163_s18  ;;  %p169_p5 = scmp.lt.s32.totalorder %s163_s18, %s163_s18 }
   0xc   :  { %p170_p6 = por %p169_p5, %p168_p4 }
   0xe   :  { %p171_p7 = pnand %p170_p6, %p164_p3 }
  0x10   :  { %174 = shalt.err (!%p171_p7)
}
  0x11   :  { %s226_s19 = smov 128   ;;  %s227_s20 = smov 8  }
  0x12   :  { %27 = dma.hbm_to_vmem [thread:$0]  %s281_s0, 256, %s22_s10, [#allocation4], %s226_s19, %s226_s19, %s227_s20  }
  0x13   :  { %s228_s23 = smov [#allocation6]   ;;  %s175_s27 = scalar_lea.hbm %s282_s1, 256 }
  0x14   :  { %s39_s24 = sshll.u32 %s228_s23, 4  ;;  %p176_p8 = scmp.ne.s32.totalorder %s282_s1, %s175_s27  ;;  %s40_s24 = int_to_ptr.vmem [resolvable:$true] %s39_s24 }
  0x15   :  { %p179_p9 = scmp.lt.u32.totalorder %s175_s27, %s282_s1 }
  0x17   :  { %p181_p10 = pnand %p179_p9, %p176_p8 }
  0x19   :  { %184 = shalt.err (!%p181_p10)
}
  0x1a   :  { %s185_s4 = scalar_lea.vmem %s40_s24, 256  ;;  %p190_p12 = scmp.lt.s32.totalorder %s40_s24, %s40_s24 }
  0x1b   :  { %p186_p11 = scmp.ne.s32.totalorder %s40_s24, %s185_s4  ;;  %p191_p13 = scmp.lt.s32.totalorder %s185_s4, %s185_s4 }
  0x1d   :  { %p192_p0 = por %p191_p13, %p190_p12 }
  0x1f   :  { %p193_p1 = pnand %p192_p0, %p186_p11 }
  0x21   :  { %196 = shalt.err (!%p193_p1)
}
  0x22   :  { %45 = dma.hbm_to_vmem [thread:$0]  %s282_s1, 256, %s40_s24, [#allocation7], %s226_s19, %s226_s19, %s227_s20  }
  0x23   :  { %219 = dma.done.wait [#allocation4], 256  }
  0x24   :  { %220 = vsyncadd [#allocation4], 4294967040 }
  0x25   :  { %221 = dma.done.wait [#allocation7], 256  }
  0x26   :  { %222 = vsyncadd [#allocation7], 4294967040  ;;  %v67_v0 = vld [vmem:[#allocation3] sm:$0xff]  ;;  %v68_v1 = vld [vmem:[#allocation3 + $0x8] sm:$0xff]  ;;  %v71_v6 = vlaneseq  ;;  %s229_s1 = smov [#allocation8]  }
  0x27   :  { %v85_v2 = vadd.f32 1e-10, %v67_v0  ;;  %v86_v3 = vadd.f32 1e-10, %v68_v1  ;;  %v95_v4 = vsub.f32 1.0, %v67_v0  ;;  %v96_v5 = vsub.f32 1.0, %v68_v1 }
  0x28   :  { %v72_v9 = vshrl.u32 %v71_v6, 7  ;;  %v69_v11 = vld [vmem:[#allocation6] sm:$0xff]  ;;  %v70_v13 = vld [vmem:[#allocation6 + $0x8] sm:$0xff]  ;;  %v75_v15 = vand.u32 127, %v71_v6  ;;  %s126_s6 = sshll.u32 %s229_s1, 4  ;;  %s127_s6 = int_to_ptr.vmem [resolvable:$true] %s126_s6 }
  0x29   :  { %145 = vlog2.f32 %v85_v2  ;;  %v97_v7 = vadd.f32 1e-10, %v95_v4  ;;  %v98_v8 = vadd.f32 1e-10, %v96_v5  ;;  %v93_v20 = vsub.f32 1.0, %v69_v11  ;;  %s197_s7 = scalar_lea.vmem %s127_s6, 128  ;;  %p202_p3 = scmp.lt.s32.totalorder %s127_s6, %s127_s6 }
  0x2a   :  { %147 = vlog2.f32 %v86_v3  ;;  %v73_v10 = vadd.s32 8, %v72_v9  ;;  %v76_v16 = vmul.u32 128, %v72_v9  ;;  %v94_v22 = vsub.f32 1.0, %v70_v13  ;;  %p198_p2 = scmp.ne.s32.totalorder %s127_s6, %s197_s7  ;;  %p203_p4 = scmp.lt.s32.totalorder %s197_s7, %s197_s7 }
  0x2b   :  { %149 = vlog2.f32 %v97_v7 }
  0x2c   :  { %151 = vlog2.f32 %v98_v8  ;;  %v77_v18 = vmul.u32 128, %v73_v10  ;;  %v81_v26 = vadd.s32 %v76_v16, %v75_v15  ;;  %p204_p5 = por %p203_p4, %p202_p3 }
  0x2e   :  { %v82_v29 = vadd.s32 %v77_v18, %v75_v15  ;;  %vm83_vm0 = vcmp.lt.s32.totalorder %v81_v26, 2048  ;;  %p205_p6 = pnand %p204_p5, %p198_p2 }
  0x30   :  { %vm84_vm1 = vcmp.lt.s32.totalorder %v82_v29, 2048 }
  0x33   :  { %v146_v12 = vpop.eup %145 }
  0x34   :  { %v148_v14 = vpop.eup %147  ;;  %v88_v17 = vmul.f32 0.6931472, %v146_v12 }
  0x35   :  { %v90_v19 = vmul.f32 0.6931472, %v148_v14  ;;  %v150_v21 = vpop.eup %149 }
  0x36   :  { %v152_v23 = vpop.eup %151  ;;  %v91_v24 = vmul.f32 %v88_v17, %v69_v11  ;;  %v100_v25 = vmul.f32 0.6931472, %v150_v21 }
  0x37   :  { %v92_v27 = vmul.f32 %v90_v19, %v70_v13  ;;  %v102_v28 = vmul.f32 0.6931472, %v152_v23 }
  0x38   :  { %v103_v30 = vmul.f32 %v100_v25, %v93_v20 }
  0x39   :  { %v104_v31 = vmul.f32 %v102_v28, %v94_v22 }
  0x3a   :  { %v105_v32 = vadd.f32 %v103_v30, %v91_v24 }
  0x3b   :  { %v106_v33 = vadd.f32 %v104_v31, %v92_v27 }
  0x3c   :  { %v107_v34 = vsub.f32 0.0, %v105_v32 }
  0x3d   :  { %v108_v35 = vsub.f32 0.0, %v106_v33 }
  0x3e   :  { %v109_v36 = vsel %vm83_vm0, %v107_v34, 0.0 }
  0x3f   :  { %v110_v37 = vsel %vm84_vm1, %v108_v35, 0.0 }
  0x40   :  { %v112_v38 = vadd.f32 %v110_v37, %v109_v36 }
  0x42   :  { %119 = vst [vmem:[#allocation8] sm:$0xff] %v112_v38 }
  0x43   :  { %208 = shalt.err (!%p205_p6)
}
  0x44   :  { %s209_s10 = scalar_lea.hbm %s283_s2, 128 }
  0x45   :  { %p210_p7 = scmp.ne.s32.totalorder %s283_s2, %s209_s10  ;;  %p213_p8 = scmp.lt.u32.totalorder %s209_s10, %s283_s2 }
  0x47   :  { %p215_p9 = pnand %p213_p8, %p210_p7 }
  0x49   :  { %218 = shalt.err (!%p215_p9)
}
  0x4a   :  { %129 = dma.vmem_to_hbm [thread:$0]  %s127_s6, 128, %s283_s2, [#allocation5]  }
  0x4b   :  { %223 = dma.done.wait [#allocation5], 128  }
  0x4c   :  { %224 = vsyncadd [#allocation5], 4294967168 }
  0x4d   :  { %133 = vsyncpa [#allocation4], 1 }
  0x4e   :  { %134 = vsyncpa [#allocation7], 1 }
  0x4f   :  { %135 = vsyncpa [#allocation5], 1 }

</bundles_post_ra>
